<compile_context>
chip_gen: v7x
topology: tpu7x:2x2x1
jax: 0.10.0
libtpu: 0.0.40
codegen_flags: <defaults>
</compile_context>

<pallas_src>
import math
import jax
import jax.numpy as jnp
from jax.experimental import pallas as pl
from jax.experimental.pallas import tpu as pltpu

GRID_SIZE = 5
SPLINE_ORDER = 3
NUM_SPLINE_BASIS = GRID_SIZE + SPLINE_ORDER          # 8 spline basis fns / feature
_KNOT_STEP = 2.0 / GRID_SIZE                         # uniform knots, range [-1, 1]
KNOTS = [i * _KNOT_STEP - 1.0
         for i in range(-SPLINE_ORDER, GRID_SIZE + SPLINE_ORDER + 1)]   # 12 knots
LANE = 128
MB = 1024 * 1024


def _round_up(x, m):
    return ((x + m - 1) // m) * m


def _vmem_limit(resident_bytes):
    # 1.5x headroom over the estimated resident set, clamped to [16, 56] MiB
    # (56 MiB stays under v7x's 64 MiB physical VMEM; v5e/v6e have 128 MiB).
    return int(min(max(int(resident_bytes * 1.5), 16 * MB), 56 * MB))


def _bspline_bases(v):
    """Cox-de Boor recurrence with compile-time uniform knots.

    v: (M, F) float32 -> list of NUM_SPLINE_BASIS arrays of shape (M, F).
    x outside [-1, 1] (and exactly at the right boundary) gets zero basis.
    """
    bases = [((v >= KNOTS[i]) & (v < KNOTS[i + 1])).astype(jnp.float32)
             for i in range(len(KNOTS) - 1)]
    for k in range(1, SPLINE_ORDER + 1):
        nxt = []
        for i in range(len(bases) - 1):
            left = (v - KNOTS[i]) * (1.0 / (KNOTS[i + k] - KNOTS[i]))
            right = (KNOTS[i + k + 1] - v) * (1.0 / (KNOTS[i + k + 1] - KNOTS[i + 1]))
            nxt.append(left * bases[i] + right * bases[i + 1])
        bases = nxt
    return bases                                      # NUM_SPLINE_BASIS arrays


def _masked_softmax_rows(s2_col, adj_f):
    """Row softmax of e[i, j] = s2[j] over the neighbourhood adj_f[i, j] in {0,1}.

    s2_col: (N, 1) f32 source scores; adj_f: (T, N) f32 dense 0/1 tile.
    (The destination-side score a1.HW_i is constant per row and cancels in the
    softmax, so only the source-side score s2 is needed.)
    Rows with no neighbours return all zeros (PyG scatter semantics).
    """
    e = jnp.transpose(s2_col) + (adj_f - 1.0) * 1e30   # -1e30 bias off-graph
    m = jnp.max(e, axis=-1, keepdims=True)
    p = jnp.exp(e - m) * adj_f
    denom = jnp.sum(p, axis=-1, keepdims=True)
    return p * (1.0 / (denom + 1e-16))                 # PyG softmax eps


# ----------------------------------------------------------------------------
# Kernel A: fused first-layer KAN for all heads (row-tiled, parallel).
#   hw = [silu(x) | B_0(x) | ... | B_7(x)] @ W1     (single K = 9*Fin matmul)
# ----------------------------------------------------------------------------
def _kan_heads_kernel(x_ref, w1_ref, hw_ref):
    x = x_ref[...]                                           # (tn, Fin) f32
    feats = jnp.concatenate([x * jax.nn.sigmoid(x)] + _bspline_bases(x), axis=-1)
    hw_ref[...] = jnp.dot(feats.astype(jnp.bfloat16), w1_ref[...],
                          preferred_element_type=jnp.float32)


# ----------------------------------------------------------------------------
# Kernel B: per-head masked attention over HW + output-layer KAN on the head
# concat (row-tiled over destination nodes, parallel).
# ----------------------------------------------------------------------------
def _attn_heads_kan_out_kernel(hw_ref, adj_ref, a2h_ref, maskh_ref, w2_ref,
                               hwo_ref):
    f32, bf16 = jnp.float32, jnp.bfloat16
    adj_f = adj_ref[...].astype(f32)                         # (tn, N) 0/1
    hw = hw_ref[...]                                         # (N, hcat) f32
    hw_bf = hw.astype(bf16)
    tn = adj_f.shape[0]
    hcat_pad = hw.shape[1]
    nheads = a2h_ref.shape[0]

    def head_body(h, out_all):
        # source-side attention score for head h (a2 lives only in its columns)
        s2 = jnp.sum(hw * a2h_ref[h], axis=-1, keepdims=True)        # (N, 1)
        attn = _masked_softmax_rows(s2, adj_f)                       # (tn, N)
        # attn_h @ (HW masked to head h's columns) writes head h's slice of the
        # concat directly (other columns stay zero) -> MXU accumulation builds
        # torch.cat([out_0, ..., out_{H-1}], dim=1) with no relayout.
        return out_all + jnp.dot(attn.astype(bf16), hw_bf * maskh_ref[h],
                                 preferred_element_type=f32)

    out_all = jax.lax.fori_loop(0, nheads, head_body,
                                jnp.zeros((tn, hcat_pad), f32))

    # Output-layer KAN once on the real head concat (padding columns have zero
    # weight rows in W2, so their nonzero spline bases contribute nothing).
    feats = jnp.concatenate([out_all * jax.nn.sigmoid(out_all)]
                            + _bspline_bases(out_all), axis=-1)
    hwo_ref[...] = jnp.dot(feats.astype(bf16), w2_ref[...],
                           preferred_element_type=f32)


# ----------------------------------------------------------------------------
# Kernel C: output attention layer (row-tiled, parallel).
# ----------------------------------------------------------------------------
def _attn_out_kernel(hwo_ref, adj_ref, a2o_ref, out_ref):
    f32, bf16 = jnp.float32, jnp.bfloat16
    adj_f = adj_ref[...].astype(f32)                         # (tn, N)
    hwo = hwo_ref[...]                                       # (N, nc_pad) f32
    s2 = jnp.sum(hwo * a2o_ref[...], axis=-1, keepdims=True)
    attn = _masked_softmax_rows(s2, adj_f)
    out_ref[...] = jnp.dot(attn.astype(bf16), hwo.astype(bf16),
                           preferred_element_type=f32)


# ----------------------------------------------------------------------------
# Parameter init (same semantics as the reference-ish KANLayer) and packing.
# ----------------------------------------------------------------------------
def init_kan_gat_layer(key, fin, fout):
    k1, k2, k3 = jax.random.split(key, 3)
    base_w = jax.random.normal(k1, (fin, fout), jnp.float32) / math.sqrt(fin)
    spline_w = (jax.random.normal(k2, (fin * NUM_SPLINE_BASIS, fout), jnp.float32)
                * 0.1 / math.sqrt(fin))
    # nn.init.xavier_uniform_(a, gain=1.414) on shape (2*fout, 1)
    bound = 1.414 * math.sqrt(6.0 / (2 * fout + 1))
    a = jax.random.uniform(k3, (2 * fout, 1), jnp.float32, -bound, bound)
    # a1 multiplies HW_i (constant within each softmax group) and cancels
    # exactly in the softmax since the reference has no LeakyReLU -> kept only
    # for RNG/parameter parity, unused in the forward pass.
    return {"base_w": base_w, "spline_w": spline_w, "a1": a[:fout], "a2": a[fout:]}


def pack_kagat_params(params, nfeat, nhid, nclass, nheads):
    """Fuse base+spline weights row-wise (K = 9*Fin), pack all heads' output
    columns into one lane-dense concat block, and pad class lanes once."""
    NB = NUM_SPLINE_BASIS
    hcat = nhid * nheads
    hcat_pad = _round_up(hcat, LANE)
    nc_pad = _round_up(nclass, LANE)
    K1 = (NB + 1) * nfeat
    K2 = (NB + 1) * hcat_pad

    # ---- first layer: all heads share one fused weight block ----
    w1 = jnp.zeros((K1, hcat_pad), jnp.float32)
    a2_h = jnp.zeros((nheads, 1, hcat_pad), jnp.float32)
    mask_h = jnp.zeros((nheads, 1, hcat_pad), jnp.float32)
    for h, p in enumerate(params["heads"]):
        cols = slice(h * nhid, (h + 1) * nhid)
        w1 = w1.at[:nfeat, cols].set(p["base_w"])
        sw = p["spline_w"].reshape(nfeat, NB, nhid)
        for b in range(NB):
            w1 = w1.at[(b + 1) * nfeat:(b + 2) * nfeat, cols].set(sw[:, b, :])
        a2_h = a2_h.at[h, 0, cols].set(p["a2"][:, 0])
        mask_h = mask_h.at[h, 0, cols].set(1.0)

    # ---- output layer: fused weights over the head concat ----
    po = params["out"]                                   # in_features = nhid*nheads
    w2 = jnp.zeros((K2, nc_pad), jnp.float32)
    w2 = w2.at[:hcat, :nclass].set(po["base_w"])
    swo = po["spline_w"].reshape(hcat, NB, nclass)
    for b in range(NB):
        r0 = (b + 1) * hcat_pad
        w2 = w2.at[r0:r0 + hcat, :nclass].set(swo[:, b, :])
    a2_o = jnp.zeros((1, nc_pad), jnp.float32).at[0, :nclass].set(po["a2"][:, 0])

    return {"w1": w1.astype(jnp.bfloat16), "w2": w2.astype(jnp.bfloat16),
            "a2_h": a2_h, "mask_h": mask_h.astype(jnp.bfloat16), "a2_o": a2_o,
            "nclass": nclass, "nhid": nhid, "nheads": nheads}


# ----------------------------------------------------------------------------
# Forward wrapper: 3 row-tiled, parallel pallas_calls.
# ----------------------------------------------------------------------------
def kagat_forward(x, adj, packed):
    # F.dropout(p=0.6) in eval mode == identity (applied to x, attn, and h).
    n, nfeat = x.shape
    nclass = packed["nclass"]
    nheads = packed["nheads"]
    w1, w2 = packed["w1"], packed["w2"]
    hcat_pad = packed["a2_h"].shape[-1]
    nc_pad = packed["a2_o"].shape[-1]
    K1, K2 = w1.shape[0], w2.shape[0]

    # Row-tile size: 8-aligned; capped so (tile, N) softmax temporaries bound VMEM.
    tn = min(_round_up(n, 8), 256)
    n_pad = _round_up(n, tn)
    n_tiles = n_pad // tn

    # Padded nodes are isolated (zero adj rows/cols) -> zero output, sliced away.
    xp = jnp.zeros((n_pad, nfeat), jnp.float32).at[:n, :].set(x)
    adj_i8 = jnp.zeros((n_pad, n_pad), jnp.int8).at[:n, :n].set(
        (adj > 0.5).astype(jnp.int8))

    # ---- kernel A: fused KAN for all heads ---------------------------------
    vmem_a = (2 * tn * nfeat * 4 + K1 * hcat_pad * 2 + 2 * tn * hcat_pad * 4
              + tn * K1 * 6 + 14 * tn * nfeat * 4)
    hw = pl.pallas_call(
        _kan_heads_kernel,
        out_shape=jax.ShapeDtypeStruct((n_pad, hcat_pad), jnp.float32),
        grid=(n_tiles,),
        in_specs=[pl.BlockSpec((tn, nfeat), lambda i: (i, 0)),
                  pl.BlockSpec((K1, hcat_pad), lambda i: (0, 0))],
        out_specs=pl.BlockSpec((tn, hcat_pad), lambda i: (i, 0)),
        compiler_params=pltpu.CompilerParams(
            dimension_semantics=("parallel",),
            vmem_limit_bytes=_vmem_limit(vmem_a)),
        cost_estimate=pl.CostEstimate(
            flops=2 * n_pad * K1 * hcat_pad,
            transcendentals=n_pad * nfeat,
            bytes_accessed=n_pad * nfeat * 4 + K1 * hcat_pad * 2
            + n_pad * hcat_pad * 4),
    )(xp, w1)

    # ---- kernel B: per-head attention + output-layer KAN --------------------
    vmem_b = (n_pad * hcat_pad * 6            # hw block (f32 + bf16 copy)
              + 2 * tn * n_pad * 1            # adj int8, double buffered
              + 3 * tn * n_pad * 4            # adj_f / e / attn temporaries
              + K2 * nc_pad * 2               # fused output weights
              + tn * hcat_pad * 4             # out_all accumulator
              + tn * K2 * 6                   # fused basis block (f32 + bf16)
              + 2 * tn * nc_pad * 4)          # output tile, double buffered
    hwo = pl.pallas_call(
        _attn_heads_kan_out_kernel,
        out_shape=jax.ShapeDtypeStruct((n_pad, nc_pad), jnp.float32),
        grid=(n_tiles,),
        in_specs=[pl.BlockSpec((n_pad, hcat_pad), lambda i: (0, 0)),     # resident
                  pl.BlockSpec((tn, n_pad), lambda i: (i, 0)),           # adj tile
                  pl.BlockSpec((nheads, 1, hcat_pad), lambda i: (0, 0, 0)),
                  pl.BlockSpec((nheads, 1, hcat_pad), lambda i: (0, 0, 0)),
                  pl.BlockSpec((K2, nc_pad), lambda i: (0, 0))],
        out_specs=pl.BlockSpec((tn, nc_pad), lambda i: (i, 0)),
        compiler_params=pltpu.CompilerParams(
            dimension_semantics=("parallel",),
            vmem_limit_bytes=_vmem_limit(vmem_b)),
        cost_estimate=pl.CostEstimate(
            flops=2 * nheads * n_pad * n_pad * hcat_pad + 2 * n_pad * K2 * nc_pad,
            transcendentals=nheads * n_pad * n_pad + n_pad * hcat_pad,
            bytes_accessed=n_pad * hcat_pad * 4 + n_pad * n_pad
            + K2 * nc_pad * 2 + n_pad * nc_pad * 4),
    )(hw, adj_i8, packed["a2_h"], packed["mask_h"], w2)

    # ---- kernel C: output attention -----------------------------------------
    vmem_c = (n_pad * nc_pad * 6 + 2 * tn * n_pad * 1 + 3 * tn * n_pad * 4
              + 2 * tn * nc_pad * 4)
    out = pl.pallas_call(
        _attn_out_kernel,
        out_shape=jax.ShapeDtypeStruct((n_pad, nc_pad), jnp.float32),
        grid=(n_tiles,),
        in_specs=[pl.BlockSpec((n_pad, nc_pad), lambda i: (0, 0)),       # resident
                  pl.BlockSpec((tn, n_pad), lambda i: (i, 0)),           # adj tile
                  pl.BlockSpec((1, nc_pad), lambda i: (0, 0))],
        out_specs=pl.BlockSpec((tn, nc_pad), lambda i: (i, 0)),
        compiler_params=pltpu.CompilerParams(
            dimension_semantics=("parallel",),
            vmem_limit_bytes=_vmem_limit(vmem_c)),
        cost_estimate=pl.CostEstimate(
            flops=2 * n_pad * n_pad * nc_pad,
            transcendentals=n_pad * n_pad,
            bytes_accessed=n_pad * nc_pad * 8 + n_pad * n_pad),
    )(hwo, adj_i8, packed["a2_o"])

    return out[:n, :nclass]                              # drop node/lane padding


# ----------------------------------------------------------------------------
if __name__ == "__main__":
    key = jax.random.PRNGKey(0)
    N, nfeat, nhid, nclass, nheads = 8, 16, 8, 4, 2

    kx, kp = jax.random.split(key)
    x = jax.random.normal(kx, (N, nfeat), jnp.float32)

    # small graph: ring + self loops; dense adjacency adj[row, col] = 1
    idx = jnp.arange(N)
    row = jnp.concatenate([idx, idx, idx])
    col = jnp.concatenate([idx, (idx + 1) % N, (idx - 1) % N])
    adj = jnp.zeros((N, N), jnp.float32).at[row, col].set(1.0)

    head_keys = jax.random.split(kp, nheads + 1)
    params = {
        "heads": [init_kan_gat_layer(head_keys[i], nfeat, nhid)
                  for i in range(nheads)],
        "out": init_kan_gat_layer(head_keys[-1], nhid * nheads, nclass),
    }
    packed = pack_kagat_params(params, nfeat, nhid, nclass, nheads)

    out = kagat_forward(x, adj, packed)
    jax.block_until_ready(out)
    assert out.shape == (N, nclass) and out.dtype == jnp.float32
    assert bool(jnp.all(jnp.isfinite(out)))
    print("KERNEL_OK")
</pallas_src>

<mosaic_0001>
module attributes {stable_mosaic.version = 11 : i64} {
  func.func @_kan_heads_kernel(%arg0: i32, %arg1: memref<8x16xf32, #tpu.memory_space<vmem>>, %arg2: memref<144x128xbf16, #tpu.memory_space<vmem>>, %arg3: memref<8x128xf32, #tpu.memory_space<vmem>>) attributes {dimension_semantics = [#tpu.dimension_semantics<parallel>], iteration_bounds = array<i64: 1>, scalar_prefetch = 0 : i64, scratch_operands = 0 : i64, tpu.core_type = #tpu.core_type<tc>, window_params = [{transform_indices = @transform_0, window_bounds = array<i64: 8, 16>}, {pipeline_mode = #tpu.pipeline_mode<synchronous>, transform_indices = @transform_1, window_bounds = array<i64: 144, 128>}, {transform_indices = @transform_2, window_bounds = array<i64: 8, 128>}]} {
    %c0 = arith.constant 0 : index
    %c0_0 = arith.constant 0 : index
    %0 = vector.load %arg1[%c0, %c0_0] : memref<8x16xf32, #tpu.memory_space<vmem>>, vector<8x16xf32>
    %1 = arith.negf %0 : vector<8x16xf32>
    %2 = math.exp %1 : vector<8x16xf32>
    %cst = arith.constant 1.000000e+00 : f32
    %3 = vector.broadcast %cst : f32 to vector<8x16xf32>
    %4 = arith.addf %3, %2 : vector<8x16xf32>
    %5 = arith.divf %3, %4 : vector<8x16xf32>
    %6 = arith.mulf %0, %5 : vector<8x16xf32>
    %cst_1 = arith.constant -2.200000e+00 : f32
    %7 = vector.broadcast %cst_1 : f32 to vector<8x16xf32>
    %8 = arith.cmpf oge, %0, %7 : vector<8x16xf32>
    %cst_2 = arith.constant -1.800000e+00 : f32
    %9 = vector.broadcast %cst_2 : f32 to vector<8x16xf32>
    %10 = arith.cmpf olt, %0, %9 : vector<8x16xf32>
    %11 = arith.andi %8, %10 : vector<8x16xi1>
    %12 = arith.extui %11 : vector<8x16xi1> to vector<8x16xi32>
    %13 = arith.sitofp %12 : vector<8x16xi32> to vector<8x16xf32>
    %cst_3 = arith.constant -1.800000e+00 : f32
    %14 = vector.broadcast %cst_3 : f32 to vector<8x16xf32>
    %15 = arith.cmpf oge, %0, %14 : vector<8x16xf32>
    %cst_4 = arith.constant -1.400000e+00 : f32
    %16 = vector.broadcast %cst_4 : f32 to vector<8x16xf32>
    %17 = arith.cmpf olt, %0, %16 : vector<8x16xf32>
    %18 = arith.andi %15, %17 : vector<8x16xi1>
    %19 = arith.extui %18 : vector<8x16xi1> to vector<8x16xi32>
    %20 = arith.sitofp %19 : vector<8x16xi32> to vector<8x16xf32>
    %cst_5 = arith.constant -1.400000e+00 : f32
    %21 = vector.broadcast %cst_5 : f32 to vector<8x16xf32>
    %22 = arith.cmpf oge, %0, %21 : vector<8x16xf32>
    %cst_6 = arith.constant -1.000000e+00 : f32
    %23 = vector.broadcast %cst_6 : f32 to vector<8x16xf32>
    %24 = arith.cmpf olt, %0, %23 : vector<8x16xf32>
    %25 = arith.andi %22, %24 : vector<8x16xi1>
    %26 = arith.extui %25 : vector<8x16xi1> to vector<8x16xi32>
    %27 = arith.sitofp %26 : vector<8x16xi32> to vector<8x16xf32>
    %cst_7 = arith.constant -1.000000e+00 : f32
    %28 = vector.broadcast %cst_7 : f32 to vector<8x16xf32>
    %29 = arith.cmpf oge, %0, %28 : vector<8x16xf32>
    %cst_8 = arith.constant -6.000000e-01 : f32
    %30 = vector.broadcast %cst_8 : f32 to vector<8x16xf32>
    %31 = arith.cmpf olt, %0, %30 : vector<8x16xf32>
    %32 = arith.andi %29, %31 : vector<8x16xi1>
    %33 = arith.extui %32 : vector<8x16xi1> to vector<8x16xi32>
    %34 = arith.sitofp %33 : vector<8x16xi32> to vector<8x16xf32>
    %cst_9 = arith.constant -6.000000e-01 : f32
    %35 = vector.broadcast %cst_9 : f32 to vector<8x16xf32>
    %36 = arith.cmpf oge, %0, %35 : vector<8x16xf32>
    %cst_10 = arith.constant -2.000000e-01 : f32
    %37 = vector.broadcast %cst_10 : f32 to vector<8x16xf32>
    %38 = arith.cmpf olt, %0, %37 : vector<8x16xf32>
    %39 = arith.andi %36, %38 : vector<8x16xi1>
    %40 = arith.extui %39 : vector<8x16xi1> to vector<8x16xi32>
    %41 = arith.sitofp %40 : vector<8x16xi32> to vector<8x16xf32>
    %cst_11 = arith.constant -2.000000e-01 : f32
    %42 = vector.broadcast %cst_11 : f32 to vector<8x16xf32>
    %43 = arith.cmpf oge, %0, %42 : vector<8x16xf32>
    %cst_12 = arith.constant 2.000000e-01 : f32
    %44 = vector.broadcast %cst_12 : f32 to vector<8x16xf32>
    %45 = arith.cmpf olt, %0, %44 : vector<8x16xf32>
    %46 = arith.andi %43, %45 : vector<8x16xi1>
    %47 = arith.extui %46 : vector<8x16xi1> to vector<8x16xi32>
    %48 = arith.sitofp %47 : vector<8x16xi32> to vector<8x16xf32>
    %cst_13 = arith.constant 2.000000e-01 : f32
    %49 = vector.broadcast %cst_13 : f32 to vector<8x16xf32>
    %50 = arith.cmpf oge, %0, %49 : vector<8x16xf32>
    %cst_14 = arith.constant 6.000000e-01 : f32
    %51 = vector.broadcast %cst_14 : f32 to vector<8x16xf32>
    %52 = arith.cmpf olt, %0, %51 : vector<8x16xf32>
    %53 = arith.andi %50, %52 : vector<8x16xi1>
    %54 = arith.extui %53 : vector<8x16xi1> to vector<8x16xi32>
    %55 = arith.sitofp %54 : vector<8x16xi32> to vector<8x16xf32>
    %cst_15 = arith.constant 6.000000e-01 : f32
    %56 = vector.broadcast %cst_15 : f32 to vector<8x16xf32>
    %57 = arith.cmpf oge, %0, %56 : vector<8x16xf32>
    %cst_16 = arith.constant 1.000000e+00 : f32
    %58 = vector.broadcast %cst_16 : f32 to vector<8x16xf32>
    %59 = arith.cmpf olt, %0, %58 : vector<8x16xf32>
    %60 = arith.andi %57, %59 : vector<8x16xi1>
    %61 = arith.extui %60 : vector<8x16xi1> to vector<8x16xi32>
    %62 = arith.sitofp %61 : vector<8x16xi32> to vector<8x16xf32>
    %cst_17 = arith.constant 1.000000e+00 : f32
    %63 = vector.broadcast %cst_17 : f32 to vector<8x16xf32>
    %64 = arith.cmpf oge, %0, %63 : vector<8x16xf32>
    %cst_18 = arith.constant 1.400000e+00 : f32
    %65 = vector.broadcast %cst_18 : f32 to vector<8x16xf32>
    %66 = arith.cmpf olt, %0, %65 : vector<8x16xf32>
    %67 = arith.andi %64, %66 : vector<8x16xi1>
    %68 = arith.extui %67 : vector<8x16xi1> to vector<8x16xi32>
    %69 = arith.sitofp %68 : vector<8x16xi32> to vector<8x16xf32>
    %cst_19 = arith.constant 1.400000e+00 : f32
    %70 = vector.broadcast %cst_19 : f32 to vector<8x16xf32>
    %71 = arith.cmpf oge, %0, %70 : vector<8x16xf32>
    %cst_20 = arith.constant 1.800000e+00 : f32
    %72 = vector.broadcast %cst_20 : f32 to vector<8x16xf32>
    %73 = arith.cmpf olt, %0, %72 : vector<8x16xf32>
    %74 = arith.andi %71, %73 : vector<8x16xi1>
    %75 = arith.extui %74 : vector<8x16xi1> to vector<8x16xi32>
    %76 = arith.sitofp %75 : vector<8x16xi32> to vector<8x16xf32>
    %cst_21 = arith.constant 1.800000e+00 : f32
    %77 = vector.broadcast %cst_21 : f32 to vector<8x16xf32>
    %78 = arith.cmpf oge, %0, %77 : vector<8x16xf32>
    %cst_22 = arith.constant 2.200000e+00 : f32
    %79 = vector.broadcast %cst_22 : f32 to vector<8x16xf32>
    %80 = arith.cmpf olt, %0, %79 : vector<8x16xf32>
    %81 = arith.andi %78, %80 : vector<8x16xi1>
    %82 = arith.extui %81 : vector<8x16xi1> to vector<8x16xi32>
    %83 = arith.sitofp %82 : vector<8x16xi32> to vector<8x16xf32>
    %cst_23 = arith.constant -2.200000e+00 : f32
    %84 = vector.broadcast %cst_23 : f32 to vector<8x16xf32>
    %85 = arith.subf %0, %84 : vector<8x16xf32>
    %cst_24 = arith.constant 2.500000e+00 : f32
    %86 = vector.broadcast %cst_24 : f32 to vector<8x16xf32>
    %87 = arith.mulf %85, %86 : vector<8x16xf32>
    %cst_25 = arith.constant -1.400000e+00 : f32
    %88 = vector.broadcast %cst_25 : f32 to vector<8x16xf32>
    %89 = arith.subf %88, %0 : vector<8x16xf32>
    %cst_26 = arith.constant 2.500000e+00 : f32
    %90 = vector.broadcast %cst_26 : f32 to vector<8x16xf32>
    %91 = arith.mulf %89, %90 : vector<8x16xf32>
    %92 = arith.mulf %87, %13 : vector<8x16xf32>
    %93 = arith.mulf %91, %20 : vector<8x16xf32>
    %94 = arith.addf %92, %93 : vector<8x16xf32>
    %cst_27 = arith.constant -1.800000e+00 : f32
    %95 = vector.broadcast %cst_27 : f32 to vector<8x16xf32>
    %96 = arith.subf %0, %95 : vector<8x16xf32>
    %cst_28 = arith.constant 2.500000e+00 : f32
    %97 = vector.broadcast %cst_28 : f32 to vector<8x16xf32>
    %98 = arith.mulf %96, %97 : vector<8x16xf32>
    %cst_29 = arith.constant -1.000000e+00 : f32
    %99 = vector.broadcast %cst_29 : f32 to vector<8x16xf32>
    %100 = arith.subf %99, %0 : vector<8x16xf32>
    %cst_30 = arith.constant 2.500000e+00 : f32
    %101 = vector.broadcast %cst_30 : f32 to vector<8x16xf32>
    %102 = arith.mulf %100, %101 : vector<8x16xf32>
    %103 = arith.mulf %98, %20 : vector<8x16xf32>
    %104 = arith.mulf %102, %27 : vector<8x16xf32>
    %105 = arith.addf %103, %104 : vector<8x16xf32>
    %cst_31 = arith.constant -1.400000e+00 : f32
    %106 = vector.broadcast %cst_31 : f32 to vector<8x16xf32>
    %107 = arith.subf %0, %106 : vector<8x16xf32>
    %cst_32 = arith.constant 2.500000e+00 : f32
    %108 = vector.broadcast %cst_32 : f32 to vector<8x16xf32>
    %109 = arith.mulf %107, %108 : vector<8x16xf32>
    %cst_33 = arith.constant -6.000000e-01 : f32
    %110 = vector.broadcast %cst_33 : f32 to vector<8x16xf32>
    %111 = arith.subf %110, %0 : vector<8x16xf32>
    %cst_34 = arith.constant 2.500000e+00 : f32
    %112 = vector.broadcast %cst_34 : f32 to vector<8x16xf32>
    %113 = arith.mulf %111, %112 : vector<8x16xf32>
    %114 = arith.mulf %109, %27 : vector<8x16xf32>
    %115 = arith.mulf %113, %34 : vector<8x16xf32>
    %116 = arith.addf %114, %115 : vector<8x16xf32>
    %cst_35 = arith.constant -1.000000e+00 : f32
    %117 = vector.broadcast %cst_35 : f32 to vector<8x16xf32>
    %118 = arith.subf %0, %117 : vector<8x16xf32>
    %cst_36 = arith.constant 2.500000e+00 : f32
    %119 = vector.broadcast %cst_36 : f32 to vector<8x16xf32>
    %120 = arith.mulf %118, %119 : vector<8x16xf32>
    %cst_37 = arith.constant -2.000000e-01 : f32
    %121 = vector.broadcast %cst_37 : f32 to vector<8x16xf32>
    %122 = arith.subf %121, %0 : vector<8x16xf32>
    %cst_38 = arith.constant 2.500000e+00 : f32
    %123 = vector.broadcast %cst_38 : f32 to vector<8x16xf32>
    %124 = arith.mulf %122, %123 : vector<8x16xf32>
    %125 = arith.mulf %120, %34 : vector<8x16xf32>
    %126 = arith.mulf %124, %41 : vector<8x16xf32>
    %127 = arith.addf %125, %126 : vector<8x16xf32>
    %cst_39 = arith.constant -6.000000e-01 : f32
    %128 = vector.broadcast %cst_39 : f32 to vector<8x16xf32>
    %129 = arith.subf %0, %128 : vector<8x16xf32>
    %cst_40 = arith.constant 2.500000e+00 : f32
    %130 = vector.broadcast %cst_40 : f32 to vector<8x16xf32>
    %131 = arith.mulf %129, %130 : vector<8x16xf32>
    %cst_41 = arith.constant 2.000000e-01 : f32
    %132 = vector.broadcast %cst_41 : f32 to vector<8x16xf32>
    %133 = arith.subf %132, %0 : vector<8x16xf32>
    %cst_42 = arith.constant 2.500000e+00 : f32
    %134 = vector.broadcast %cst_42 : f32 to vector<8x16xf32>
    %135 = arith.mulf %133, %134 : vector<8x16xf32>
    %136 = arith.mulf %131, %41 : vector<8x16xf32>
    %137 = arith.mulf %135, %48 : vector<8x16xf32>
    %138 = arith.addf %136, %137 : vector<8x16xf32>
    %cst_43 = arith.constant -2.000000e-01 : f32
    %139 = vector.broadcast %cst_43 : f32 to vector<8x16xf32>
    %140 = arith.subf %0, %139 : vector<8x16xf32>
    %cst_44 = arith.constant 2.500000e+00 : f32
    %141 = vector.broadcast %cst_44 : f32 to vector<8x16xf32>
    %142 = arith.mulf %140, %141 : vector<8x16xf32>
    %cst_45 = arith.constant 6.000000e-01 : f32
    %143 = vector.broadcast %cst_45 : f32 to vector<8x16xf32>
    %144 = arith.subf %143, %0 : vector<8x16xf32>
    %cst_46 = arith.constant 2.500000e+00 : f32
    %145 = vector.broadcast %cst_46 : f32 to vector<8x16xf32>
    %146 = arith.mulf %144, %145 : vector<8x16xf32>
    %147 = arith.mulf %142, %48 : vector<8x16xf32>
    %148 = arith.mulf %146, %55 : vector<8x16xf32>
    %149 = arith.addf %147, %148 : vector<8x16xf32>
    %cst_47 = arith.constant 2.000000e-01 : f32
    %150 = vector.broadcast %cst_47 : f32 to vector<8x16xf32>
    %151 = arith.subf %0, %150 : vector<8x16xf32>
    %cst_48 = arith.constant 2.500000e+00 : f32
    %152 = vector.broadcast %cst_48 : f32 to vector<8x16xf32>
    %153 = arith.mulf %151, %152 : vector<8x16xf32>
    %cst_49 = arith.constant 1.000000e+00 : f32
    %154 = vector.broadcast %cst_49 : f32 to vector<8x16xf32>
    %155 = arith.subf %154, %0 : vector<8x16xf32>
    %cst_50 = arith.constant 2.500000e+00 : f32
    %156 = vector.broadcast %cst_50 : f32 to vector<8x16xf32>
    %157 = arith.mulf %155, %156 : vector<8x16xf32>
    %158 = arith.mulf %153, %55 : vector<8x16xf32>
    %159 = arith.mulf %157, %62 : vector<8x16xf32>
    %160 = arith.addf %158, %159 : vector<8x16xf32>
    %cst_51 = arith.constant 6.000000e-01 : f32
    %161 = vector.broadcast %cst_51 : f32 to vector<8x16xf32>
    %162 = arith.subf %0, %161 : vector<8x16xf32>
    %cst_52 = arith.constant 2.500000e+00 : f32
    %163 = vector.broadcast %cst_52 : f32 to vector<8x16xf32>
    %164 = arith.mulf %162, %163 : vector<8x16xf32>
    %cst_53 = arith.constant 1.400000e+00 : f32
    %165 = vector.broadcast %cst_53 : f32 to vector<8x16xf32>
    %166 = arith.subf %165, %0 : vector<8x16xf32>
    %cst_54 = arith.constant 2.500000e+00 : f32
    %167 = vector.broadcast %cst_54 : f32 to vector<8x16xf32>
    %168 = arith.mulf %166, %167 : vector<8x16xf32>
    %169 = arith.mulf %164, %62 : vector<8x16xf32>
    %170 = arith.mulf %168, %69 : vector<8x16xf32>
    %171 = arith.addf %169, %170 : vector<8x16xf32>
    %cst_55 = arith.constant 1.000000e+00 : f32
    %172 = vector.broadcast %cst_55 : f32 to vector<8x16xf32>
    %173 = arith.subf %0, %172 : vector<8x16xf32>
    %cst_56 = arith.constant 2.500000e+00 : f32
    %174 = vector.broadcast %cst_56 : f32 to vector<8x16xf32>
    %175 = arith.mulf %173, %174 : vector<8x16xf32>
    %cst_57 = arith.constant 1.800000e+00 : f32
    %176 = vector.broadcast %cst_57 : f32 to vector<8x16xf32>
    %177 = arith.subf %176, %0 : vector<8x16xf32>
    %cst_58 = arith.constant 2.500000e+00 : f32
    %178 = vector.broadcast %cst_58 : f32 to vector<8x16xf32>
    %179 = arith.mulf %177, %178 : vector<8x16xf32>
    %180 = arith.mulf %175, %69 : vector<8x16xf32>
    %181 = arith.mulf %179, %76 : vector<8x16xf32>
    %182 = arith.addf %180, %181 : vector<8x16xf32>
    %cst_59 = arith.constant 1.400000e+00 : f32
    %183 = vector.broadcast %cst_59 : f32 to vector<8x16xf32>
    %184 = arith.subf %0, %183 : vector<8x16xf32>
    %cst_60 = arith.constant 2.500000e+00 : f32
    %185 = vector.broadcast %cst_60 : f32 to vector<8x16xf32>
    %186 = arith.mulf %184, %185 : vector<8x16xf32>
    %cst_61 = arith.constant 2.200000e+00 : f32
    %187 = vector.broadcast %cst_61 : f32 to vector<8x16xf32>
    %188 = arith.subf %187, %0 : vector<8x16xf32>
    %cst_62 = arith.constant 2.500000e+00 : f32
    %189 = vector.broadcast %cst_62 : f32 to vector<8x16xf32>
    %190 = arith.mulf %188, %189 : vector<8x16xf32>
    %191 = arith.mulf %186, %76 : vector<8x16xf32>
    %192 = arith.mulf %190, %83 : vector<8x16xf32>
    %193 = arith.addf %191, %192 : vector<8x16xf32>
    %cst_63 = arith.constant -2.200000e+00 : f32
    %194 = vector.broadcast %cst_63 : f32 to vector<8x16xf32>
    %195 = arith.subf %0, %194 : vector<8x16xf32>
    %cst_64 = arith.constant 1.250000e+00 : f32
    %196 = vector.broadcast %cst_64 : f32 to vector<8x16xf32>
    %197 = arith.mulf %195, %196 : vector<8x16xf32>
    %cst_65 = arith.constant -1.000000e+00 : f32
    %198 = vector.broadcast %cst_65 : f32 to vector<8x16xf32>
    %199 = arith.subf %198, %0 : vector<8x16xf32>
    %cst_66 = arith.constant 1.250000e+00 : f32
    %200 = vector.broadcast %cst_66 : f32 to vector<8x16xf32>
    %201 = arith.mulf %199, %200 : vector<8x16xf32>
    %202 = arith.mulf %197, %94 : vector<8x16xf32>
    %203 = arith.mulf %201, %105 : vector<8x16xf32>
    %204 = arith.addf %202, %203 : vector<8x16xf32>
    %cst_67 = arith.constant -1.800000e+00 : f32
    %205 = vector.broadcast %cst_67 : f32 to vector<8x16xf32>
    %206 = arith.subf %0, %205 : vector<8x16xf32>
    %cst_68 = arith.constant 1.250000e+00 : f32
    %207 = vector.broadcast %cst_68 : f32 to vector<8x16xf32>
    %208 = arith.mulf %206, %207 : vector<8x16xf32>
    %cst_69 = arith.constant -6.000000e-01 : f32
    %209 = vector.broadcast %cst_69 : f32 to vector<8x16xf32>
    %210 = arith.subf %209, %0 : vector<8x16xf32>
    %cst_70 = arith.constant 1.250000e+00 : f32
    %211 = vector.broadcast %cst_70 : f32 to vector<8x16xf32>
    %212 = arith.mulf %210, %211 : vector<8x16xf32>
    %213 = arith.mulf %208, %105 : vector<8x16xf32>
    %214 = arith.mulf %212, %116 : vector<8x16xf32>
    %215 = arith.addf %213, %214 : vector<8x16xf32>
    %cst_71 = arith.constant -1.400000e+00 : f32
    %216 = vector.broadcast %cst_71 : f32 to vector<8x16xf32>
    %217 = arith.subf %0, %216 : vector<8x16xf32>
    %cst_72 = arith.constant 1.250000e+00 : f32
    %218 = vector.broadcast %cst_72 : f32 to vector<8x16xf32>
    %219 = arith.mulf %217, %218 : vector<8x16xf32>
    %cst_73 = arith.constant -2.000000e-01 : f32
    %220 = vector.broadcast %cst_73 : f32 to vector<8x16xf32>
    %221 = arith.subf %220, %0 : vector<8x16xf32>
    %cst_74 = arith.constant 1.250000e+00 : f32
    %222 = vector.broadcast %cst_74 : f32 to vector<8x16xf32>
    %223 = arith.mulf %221, %222 : vector<8x16xf32>
    %224 = arith.mulf %219, %116 : vector<8x16xf32>
    %225 = arith.mulf %223, %127 : vector<8x16xf32>
    %226 = arith.addf %224, %225 : vector<8x16xf32>
    %cst_75 = arith.constant -1.000000e+00 : f32
    %227 = vector.broadcast %cst_75 : f32 to vector<8x16xf32>
    %228 = arith.subf %0, %227 : vector<8x16xf32>
    %cst_76 = arith.constant 1.250000e+00 : f32
    %229 = vector.broadcast %cst_76 : f32 to vector<8x16xf32>
    %230 = arith.mulf %228, %229 : vector<8x16xf32>
    %cst_77 = arith.constant 2.000000e-01 : f32
    %231 = vector.broadcast %cst_77 : f32 to vector<8x16xf32>
    %232 = arith.subf %231, %0 : vector<8x16xf32>
    %cst_78 = arith.constant 1.250000e+00 : f32
    %233 = vector.broadcast %cst_78 : f32 to vector<8x16xf32>
    %234 = arith.mulf %232, %233 : vector<8x16xf32>
    %235 = arith.mulf %230, %127 : vector<8x16xf32>
    %236 = arith.mulf %234, %138 : vector<8x16xf32>
    %237 = arith.addf %235, %236 : vector<8x16xf32>
    %cst_79 = arith.constant -6.000000e-01 : f32
    %238 = vector.broadcast %cst_79 : f32 to vector<8x16xf32>
    %239 = arith.subf %0, %238 : vector<8x16xf32>
    %cst_80 = arith.constant 1.250000e+00 : f32
    %240 = vector.broadcast %cst_80 : f32 to vector<8x16xf32>
    %241 = arith.mulf %239, %240 : vector<8x16xf32>
    %cst_81 = arith.constant 6.000000e-01 : f32
    %242 = vector.broadcast %cst_81 : f32 to vector<8x16xf32>
    %243 = arith.subf %242, %0 : vector<8x16xf32>
    %cst_82 = arith.constant 1.250000e+00 : f32
    %244 = vector.broadcast %cst_82 : f32 to vector<8x16xf32>
    %245 = arith.mulf %243, %244 : vector<8x16xf32>
    %246 = arith.mulf %241, %138 : vector<8x16xf32>
    %247 = arith.mulf %245, %149 : vector<8x16xf32>
    %248 = arith.addf %246, %247 : vector<8x16xf32>
    %cst_83 = arith.constant -2.000000e-01 : f32
    %249 = vector.broadcast %cst_83 : f32 to vector<8x16xf32>
    %250 = arith.subf %0, %249 : vector<8x16xf32>
    %cst_84 = arith.constant 1.250000e+00 : f32
    %251 = vector.broadcast %cst_84 : f32 to vector<8x16xf32>
    %252 = arith.mulf %250, %251 : vector<8x16xf32>
    %cst_85 = arith.constant 1.000000e+00 : f32
    %253 = vector.broadcast %cst_85 : f32 to vector<8x16xf32>
    %254 = arith.subf %253, %0 : vector<8x16xf32>
    %cst_86 = arith.constant 1.250000e+00 : f32
    %255 = vector.broadcast %cst_86 : f32 to vector<8x16xf32>
    %256 = arith.mulf %254, %255 : vector<8x16xf32>
    %257 = arith.mulf %252, %149 : vector<8x16xf32>
    %258 = arith.mulf %256, %160 : vector<8x16xf32>
    %259 = arith.addf %257, %258 : vector<8x16xf32>
    %cst_87 = arith.constant 2.000000e-01 : f32
    %260 = vector.broadcast %cst_87 : f32 to vector<8x16xf32>
    %261 = arith.subf %0, %260 : vector<8x16xf32>
    %cst_88 = arith.constant 1.250000e+00 : f32
    %262 = vector.broadcast %cst_88 : f32 to vector<8x16xf32>
    %263 = arith.mulf %261, %262 : vector<8x16xf32>
    %cst_89 = arith.constant 1.400000e+00 : f32
    %264 = vector.broadcast %cst_89 : f32 to vector<8x16xf32>
    %265 = arith.subf %264, %0 : vector<8x16xf32>
    %cst_90 = arith.constant 1.250000e+00 : f32
    %266 = vector.broadcast %cst_90 : f32 to vector<8x16xf32>
    %267 = arith.mulf %265, %266 : vector<8x16xf32>
    %268 = arith.mulf %263, %160 : vector<8x16xf32>
    %269 = arith.mulf %267, %171 : vector<8x16xf32>
    %270 = arith.addf %268, %269 : vector<8x16xf32>
    %cst_91 = arith.constant 6.000000e-01 : f32
    %271 = vector.broadcast %cst_91 : f32 to vector<8x16xf32>
    %272 = arith.subf %0, %271 : vector<8x16xf32>
    %cst_92 = arith.constant 1.250000e+00 : f32
    %273 = vector.broadcast %cst_92 : f32 to vector<8x16xf32>
    %274 = arith.mulf %272, %273 : vector<8x16xf32>
    %cst_93 = arith.constant 1.800000e+00 : f32
    %275 = vector.broadcast %cst_93 : f32 to vector<8x16xf32>
    %276 = arith.subf %275, %0 : vector<8x16xf32>
    %cst_94 = arith.constant 1.250000e+00 : f32
    %277 = vector.broadcast %cst_94 : f32 to vector<8x16xf32>
    %278 = arith.mulf %276, %277 : vector<8x16xf32>
    %279 = arith.mulf %274, %171 : vector<8x16xf32>
    %280 = arith.mulf %278, %182 : vector<8x16xf32>
    %281 = arith.addf %279, %280 : vector<8x16xf32>
    %cst_95 = arith.constant 1.000000e+00 : f32
    %282 = vector.broadcast %cst_95 : f32 to vector<8x16xf32>
    %283 = arith.subf %0, %282 : vector<8x16xf32>
    %cst_96 = arith.constant 1.250000e+00 : f32
    %284 = vector.broadcast %cst_96 : f32 to vector<8x16xf32>
    %285 = arith.mulf %283, %284 : vector<8x16xf32>
    %cst_97 = arith.constant 2.200000e+00 : f32
    %286 = vector.broadcast %cst_97 : f32 to vector<8x16xf32>
    %287 = arith.subf %286, %0 : vector<8x16xf32>
    %cst_98 = arith.constant 1.250000e+00 : f32
    %288 = vector.broadcast %cst_98 : f32 to vector<8x16xf32>
    %289 = arith.mulf %287, %288 : vector<8x16xf32>
    %290 = arith.mulf %285, %182 : vector<8x16xf32>
    %291 = arith.mulf %289, %193 : vector<8x16xf32>
    %292 = arith.addf %290, %291 : vector<8x16xf32>
    %cst_99 = arith.constant -2.200000e+00 : f32
    %293 = vector.broadcast %cst_99 : f32 to vector<8x16xf32>
    %294 = arith.subf %0, %293 : vector<8x16xf32>
    %cst_100 = arith.constant 0.833333313 : f32
    %295 = vector.broadcast %cst_100 : f32 to vector<8x16xf32>
    %296 = arith.mulf %294, %295 : vector<8x16xf32>
    %cst_101 = arith.constant -6.000000e-01 : f32
    %297 = vector.broadcast %cst_101 : f32 to vector<8x16xf32>
    %298 = arith.subf %297, %0 : vector<8x16xf32>
    %cst_102 = arith.constant 0.833333313 : f32
    %299 = vector.broadcast %cst_102 : f32 to vector<8x16xf32>
    %300 = arith.mulf %298, %299 : vector<8x16xf32>
    %301 = arith.mulf %296, %204 : vector<8x16xf32>
    %302 = arith.mulf %300, %215 : vector<8x16xf32>
    %303 = arith.addf %301, %302 : vector<8x16xf32>
    %cst_103 = arith.constant -1.800000e+00 : f32
    %304 = vector.broadcast %cst_103 : f32 to vector<8x16xf32>
    %305 = arith.subf %0, %304 : vector<8x16xf32>
    %cst_104 = arith.constant 0.833333313 : f32
    %306 = vector.broadcast %cst_104 : f32 to vector<8x16xf32>
    %307 = arith.mulf %305, %306 : vector<8x16xf32>
    %cst_105 = arith.constant -2.000000e-01 : f32
    %308 = vector.broadcast %cst_105 : f32 to vector<8x16xf32>
    %309 = arith.subf %308, %0 : vector<8x16xf32>
    %cst_106 = arith.constant 0.833333313 : f32
    %310 = vector.broadcast %cst_106 : f32 to vector<8x16xf32>
    %311 = arith.mulf %309, %310 : vector<8x16xf32>
    %312 = arith.mulf %307, %215 : vector<8x16xf32>
    %313 = arith.mulf %311, %226 : vector<8x16xf32>
    %314 = arith.addf %312, %313 : vector<8x16xf32>
    %cst_107 = arith.constant -1.400000e+00 : f32
    %315 = vector.broadcast %cst_107 : f32 to vector<8x16xf32>
    %316 = arith.subf %0, %315 : vector<8x16xf32>
    %cst_108 = arith.constant 0.833333313 : f32
    %317 = vector.broadcast %cst_108 : f32 to vector<8x16xf32>
    %318 = arith.mulf %316, %317 : vector<8x16xf32>
    %cst_109 = arith.constant 2.000000e-01 : f32
    %319 = vector.broadcast %cst_109 : f32 to vector<8x16xf32>
    %320 = arith.subf %319, %0 : vector<8x16xf32>
    %cst_110 = arith.constant 0.833333313 : f32
    %321 = vector.broadcast %cst_110 : f32 to vector<8x16xf32>
    %322 = arith.mulf %320, %321 : vector<8x16xf32>
    %323 = arith.mulf %318, %226 : vector<8x16xf32>
    %324 = arith.mulf %322, %237 : vector<8x16xf32>
    %325 = arith.addf %323, %324 : vector<8x16xf32>
    %cst_111 = arith.constant -1.000000e+00 : f32
    %326 = vector.broadcast %cst_111 : f32 to vector<8x16xf32>
    %327 = arith.subf %0, %326 : vector<8x16xf32>
    %cst_112 = arith.constant 0.833333313 : f32
    %328 = vector.broadcast %cst_112 : f32 to vector<8x16xf32>
    %329 = arith.mulf %327, %328 : vector<8x16xf32>
    %cst_113 = arith.constant 6.000000e-01 : f32
    %330 = vector.broadcast %cst_113 : f32 to vector<8x16xf32>
    %331 = arith.subf %330, %0 : vector<8x16xf32>
    %cst_114 = arith.constant 0.833333313 : f32
    %332 = vector.broadcast %cst_114 : f32 to vector<8x16xf32>
    %333 = arith.mulf %331, %332 : vector<8x16xf32>
    %334 = arith.mulf %329, %237 : vector<8x16xf32>
    %335 = arith.mulf %333, %248 : vector<8x16xf32>
    %336 = arith.addf %334, %335 : vector<8x16xf32>
    %cst_115 = arith.constant -6.000000e-01 : f32
    %337 = vector.broadcast %cst_115 : f32 to vector<8x16xf32>
    %338 = arith.subf %0, %337 : vector<8x16xf32>
    %cst_116 = arith.constant 0.833333313 : f32
    %339 = vector.broadcast %cst_116 : f32 to vector<8x16xf32>
    %340 = arith.mulf %338, %339 : vector<8x16xf32>
    %cst_117 = arith.constant 1.000000e+00 : f32
    %341 = vector.broadcast %cst_117 : f32 to vector<8x16xf32>
    %342 = arith.subf %341, %0 : vector<8x16xf32>
    %cst_118 = arith.constant 0.833333313 : f32
    %343 = vector.broadcast %cst_118 : f32 to vector<8x16xf32>
    %344 = arith.mulf %342, %343 : vector<8x16xf32>
    %345 = arith.mulf %340, %248 : vector<8x16xf32>
    %346 = arith.mulf %344, %259 : vector<8x16xf32>
    %347 = arith.addf %345, %346 : vector<8x16xf32>
    %cst_119 = arith.constant -2.000000e-01 : f32
    %348 = vector.broadcast %cst_119 : f32 to vector<8x16xf32>
    %349 = arith.subf %0, %348 : vector<8x16xf32>
    %cst_120 = arith.constant 0.833333313 : f32
    %350 = vector.broadcast %cst_120 : f32 to vector<8x16xf32>
    %351 = arith.mulf %349, %350 : vector<8x16xf32>
    %cst_121 = arith.constant 1.400000e+00 : f32
    %352 = vector.broadcast %cst_121 : f32 to vector<8x16xf32>
    %353 = arith.subf %352, %0 : vector<8x16xf32>
    %cst_122 = arith.constant 0.833333313 : f32
    %354 = vector.broadcast %cst_122 : f32 to vector<8x16xf32>
    %355 = arith.mulf %353, %354 : vector<8x16xf32>
    %356 = arith.mulf %351, %259 : vector<8x16xf32>
    %357 = arith.mulf %355, %270 : vector<8x16xf32>
    %358 = arith.addf %356, %357 : vector<8x16xf32>
    %cst_123 = arith.constant 2.000000e-01 : f32
    %359 = vector.broadcast %cst_123 : f32 to vector<8x16xf32>
    %360 = arith.subf %0, %359 : vector<8x16xf32>
    %cst_124 = arith.constant 0.833333313 : f32
    %361 = vector.broadcast %cst_124 : f32 to vector<8x16xf32>
    %362 = arith.mulf %360, %361 : vector<8x16xf32>
    %cst_125 = arith.constant 1.800000e+00 : f32
    %363 = vector.broadcast %cst_125 : f32 to vector<8x16xf32>
    %364 = arith.subf %363, %0 : vector<8x16xf32>
    %cst_126 = arith.constant 0.833333313 : f32
    %365 = vector.broadcast %cst_126 : f32 to vector<8x16xf32>
    %366 = arith.mulf %364, %365 : vector<8x16xf32>
    %367 = arith.mulf %362, %270 : vector<8x16xf32>
    %368 = arith.mulf %366, %281 : vector<8x16xf32>
    %369 = arith.addf %367, %368 : vector<8x16xf32>
    %cst_127 = arith.constant 6.000000e-01 : f32
    %370 = vector.broadcast %cst_127 : f32 to vector<8x16xf32>
    %371 = arith.subf %0, %370 : vector<8x16xf32>
    %cst_128 = arith.constant 0.833333313 : f32
    %372 = vector.broadcast %cst_128 : f32 to vector<8x16xf32>
    %373 = arith.mulf %371, %372 : vector<8x16xf32>
    %cst_129 = arith.constant 2.200000e+00 : f32
    %374 = vector.broadcast %cst_129 : f32 to vector<8x16xf32>
    %375 = arith.subf %374, %0 : vector<8x16xf32>
    %cst_130 = arith.constant 0.833333313 : f32
    %376 = vector.broadcast %cst_130 : f32 to vector<8x16xf32>
    %377 = arith.mulf %375, %376 : vector<8x16xf32>
    %378 = arith.mulf %373, %281 : vector<8x16xf32>
    %379 = arith.mulf %377, %292 : vector<8x16xf32>
    %380 = arith.addf %378, %379 : vector<8x16xf32>
    %381 = tpu.concatenate %6, %303, %314, %325, %336, %347, %358, %369, %380 in 1 : vector<8x16xf32>, vector<8x16xf32>, vector<8x16xf32>, vector<8x16xf32>, vector<8x16xf32>, vector<8x16xf32>, vector<8x16xf32>, vector<8x16xf32>, vector<8x16xf32> -> vector<8x144xf32>
    %382 = arith.truncf %381 : vector<8x144xf32> to vector<8x144xbf16>
    %c0_131 = arith.constant 0 : index
    %c0_132 = arith.constant 0 : index
    %383 = vector.load %arg2[%c0_131, %c0_132] : memref<144x128xbf16, #tpu.memory_space<vmem>>, vector<144x128xbf16>
    %cst_133 = arith.constant dense<0.000000e+00> : vector<8x128xf32>
    %384 = tpu.matmul %382, %383, %cst_133 {dimension_numbers = #tpu.dot_dimension_numbers<[1], [0], [0], [1], [0, 0, 1, 1], [], []>} : vector<8x144xbf16>, vector<144x128xbf16>, vector<8x128xf32> -> vector<8x128xf32>
    %c0_134 = arith.constant 0 : index
    %c0_135 = arith.constant 0 : index
    %385 = vector.load %arg3[%c0_134, %c0_135] : memref<8x128xf32, #tpu.memory_space<vmem>>, vector<8x128xf32>
    tpu.vector_store %arg3[%c0_134, %c0_135], %384 {strides = array<i32>} : memref<8x128xf32, #tpu.memory_space<vmem>>, vector<8x128xf32>,
    return
  }
  func.func @transform_0(%arg0: i32) -> (i32, i32) {
    %c0_i32 = arith.constant 0 : i32
    %c0_i32_0 = arith.constant 0 : i32
    return %arg0, %c0_i32 : i32, i32
  }
  func.func @transform_1(%arg0: i32) -> (i32, i32) {
    %c0_i32 = arith.constant 0 : i32
    %c0_i32_0 = arith.constant 0 : i32
    %c0_i32_1 = arith.constant 0 : i32
    return %c0_i32, %c0_i32_0 : i32, i32
  }
  func.func @transform_2(%arg0: i32) -> (i32, i32) {
    %c0_i32 = arith.constant 0 : i32
    %c0_i32_0 = arith.constant 0 : i32
    return %arg0, %c0_i32 : i32, i32
  }
}

</mosaic_0001>

<bundles_post_ra>
// kernel: tpu_custom_call.1
= control target key start
LH: loop header
LB: loop body
LE: loop exit
PB: predicated region body
PF: predicated region fallthrough
CT: control target
= control target key end

     0   :  { %7 = vsyncpa [#allocation3], 0  ;;  %s738_s0 = inlined_call_operand.hbm [shape: f32[8,16], index: 0, kind: input, shape index: {}]   ;;  %s739_s1 = inlined_call_operand.hbm [shape: bf16[144,128], index: 1, kind: input, shape index: {}]   ;;  %s740_s2 = inlined_call_operand.hbm [shape: f32[8,128], index: 2, kind: output, shape index: {}]  }
   0x1   :  { %8 = vsyncpa [#allocation6], 0 }
   0x2   :  { %9 = vsyncpa [#allocation4], 0  ;;  %s563_s9 = smov [#allocation2]   ;;  %s564_s11 = smov [#allocation5]  }
   0x3   :  { %s16_s10 = sshll.u32 %s563_s9, 4  ;;  %s25_s12 = sshll.u32 %s564_s11, 4  ;;  %s17_s10 = int_to_ptr.vmem [resolvable:$true] %s16_s10  ;;  %s591_s12 = int_to_ptr.vmem [resolvable:$true] %s25_s12 }
   0x4   :  { %s491_s15 = scalar_lea.hbm %s738_s0, 128 }
   0x5   :  { %p492_p0 = scmp.ne.s32.totalorder %s738_s0, %s491_s15  ;;  %p495_p1 = scmp.lt.u32.totalorder %s491_s15, %s738_s0 }
   0x7   :  { %p497_p2 = pnand %p495_p1, %p492_p0 }
   0x9   :  { %500 = shalt.err (!%p497_p2)
}
   0xa   :  { %s501_s20 = scalar_lea.vmem %s17_s10, 128  ;;  %p506_p4 = scmp.lt.s32.totalorder %s17_s10, %s17_s10 }
   0xb   :  { %p502_p3 = scmp.ne.s32.totalorder %s17_s10, %s501_s20  ;;  %p507_p5 = scmp.lt.s32.totalorder %s501_s20, %s501_s20 }
   0xd   :  { %p508_p6 = por %p507_p5, %p506_p4 }
   0xf   :  { %p509_p7 = pnand %p508_p6, %p502_p3 }
  0x11   :  { %512 = shalt.err (!%p509_p7)
}
  0x12   :  { %19 = dma.hbm_to_vmem [thread:$0]  %s738_s0, 128, %s17_s10, [#allocation3]  }
  0x13   :  { %s513_s25 = scalar_lea.hbm %s739_s1, 1152 }
  0x14   :  { %p514_p8 = scmp.ne.s32.totalorder %s739_s1, %s513_s25  ;;  %p517_p9 = scmp.lt.u32.totalorder %s513_s25, %s739_s1 }
  0x16   :  { %p519_p10 = pnand %p517_p9, %p514_p8 }
  0x18   :  { %522 = shalt.err (!%p519_p10)
}
  0x19   :  { %s523_s30 = scalar_lea.vmem %s591_s12, 1152  ;;  %p528_p12 = scmp.lt.s32.totalorder %s591_s12, %s591_s12 }
  0x1a   :  { %p524_p11 = scmp.ne.s32.totalorder %s591_s12, %s523_s30  ;;  %p529_p13 = scmp.lt.s32.totalorder %s523_s30, %s523_s30 }
  0x1c   :  { %p530_p0 = por %p529_p13, %p528_p12 }
  0x1e   :  { %p531_p1 = pnand %p530_p0, %p524_p11 }
  0x20   :  { %534 = shalt.err (!%p531_p1)
}
  0x21   :  { %s565_s0 = smov 64   ;;  %s566_s3 = smov 4  }
  0x22   :  { %31 = dma.hbm_to_vmem [thread:$0]  %s739_s1, 1152, %s591_s12, [#allocation6], %s565_s0, %s565_s0, %s566_s3  }
  0x23   :  { %557 = dma.done.wait [#allocation3], 128  }
  0x24   :  { %558 = vsyncadd [#allocation3], 4294967168 }
  0x25   :  { %559 = dma.done.wait [#allocation6], 1152  }
  0x26   :  { %560 = vsyncadd [#allocation6], 4294966144  ;;  %v567_v0 = vmov 0   ;;  %v625_v1 = vld [vmem:[#allocation2] sm:$0xff]  ;;  %v568_v2 = vmov 0.0   ;;  %v478_v14 = vld [vmem:[#allocation5] sm:$0xff]  }
  0x27   :  { %376 = vmatprep.subr.bf16.mxu0 %v567_v0  ;;  %vm47_vm0 = vcmp.ge.f32.partialorder %v625_v1, -2.2  ;;  %vm48_vm1 = vcmp.lt.f32.partialorder %v625_v1, -1.8  ;;  %vm52_vm2 = vcmp.ge.f32.partialorder %v625_v1, -1.8 }
  0x28   :  { %vm49_vm3 = vmand %vm47_vm0, %vm48_vm1  ;;  %vm53_vm4 = vcmp.lt.f32.partialorder %v625_v1, -1.4  ;;  %vm57_vm5 = vcmp.ge.f32.partialorder %v625_v1, -1.4  ;;  %vm58_vm6 = vcmp.lt.f32.partialorder %v625_v1, -1.0  ;;  %vm62_vm7 = vcmp.ge.f32.partialorder %v625_v1, -1.0  ;;  %377 = vmatpush1.bf16.msra.mxu0 %v478_v14 }
  0x29   :  { %v434_v3 = vsel %vm49_vm3, 1.0, %v568_v2  ;;  %vm54_vm8 = vmand %vm52_vm2, %vm53_vm4  ;;  %vm63_vm9 = vcmp.lt.f32.partialorder %v625_v1, -0.6  ;;  %v445_v4 = vadd.f32 2.2, %v625_v1  ;;  %v111_v5 = vsub.f32 -1.0, %v625_v1  ;;  %378 = vmatprep.subr.bf16.mxu0 %v567_v0 }
  0x2a   :  { %v435_v6 = vsel %vm54_vm8, 1.0, %v568_v2  ;;  %vm59_vm10 = vmand %vm57_vm5, %vm58_vm6  ;;  %v104_v7 = vsub.f32 -1.4, %v625_v1  ;;  %v641_v8 = vadd.f32 1.8, %v625_v1  ;;  %v644_v9 = vadd.f32 1.0, %v625_v1 }
  0x2b   :  { %v436_v10 = vsel %vm59_vm10, 1.0, %v568_v2  ;;  %vm64_vm11 = vmand %vm62_vm7, %vm63_vm9  ;;  %v103_v11 = vmul.f32 2.5, %v445_v4  ;;  %v112_v12 = vmul.f32 2.5, %v111_v5  ;;  %v648_v13 = vadd.f32 1.4, %v625_v1  ;;  %v479_v19 = vld [vmem:[#allocation5 + $0x8] sm:$0xff]  }
  0x2c   :  { %v437_v15 = vsel %vm64_vm11, 1.0, %v568_v2  ;;  %v105_v16 = vmul.f32 2.5, %v104_v7  ;;  %v110_v17 = vmul.f32 2.5, %v641_v8  ;;  %v118_v18 = vsub.f32 -0.6, %v625_v1  ;;  %v480_v32 = vld [vmem:[#allocation5 + $0x10] sm:$0xff]   ;;  %379 = vmatpush1.bf16.msra.mxu0 %v479_v19 }
  0x2d   :  { %v106_v20 = vmul.f32 %v434_v3, %v103_v11  ;;  %v114_v21 = vmul.f32 %v436_v10, %v112_v12  ;;  %v117_v22 = vmul.f32 2.5, %v648_v13  ;;  %v172_v23 = vmul.f32 1.25, %v445_v4  ;;  %380 = vmatprep.subr.bf16.mxu0 %v567_v0  ;;  %v481_v52 = vld [vmem:[#allocation5 + $0x18] sm:$0xff]   ;;  %v482_v7 = vld [vmem:[#allocation5 + $0x20] sm:$0xff]   ;;  %s569_s1 = smov 16   ;;  %s570_s6 = smov 32  }
  0x2e   :  { %v107_v24 = vmul.f32 %v435_v6, %v105_v16  ;;  %v113_v25 = vmul.f32 %v435_v6, %v110_v17  ;;  %v119_v26 = vmul.f32 2.5, %v118_v18  ;;  %v173_v27 = vmul.f32 1.25, %v111_v5  ;;  %s571_s7 = smov 48   ;;  %s572_s8 = smov 80  }
  0x2f   :  { %v120_v28 = vmul.f32 %v436_v10, %v117_v22  ;;  %v177_v29 = vmul.f32 1.25, %v641_v8  ;;  %v178_v30 = vmul.f32 1.25, %v118_v18  ;;  %v217_v31 = vmul.f32 0.8333333, %v445_v4  ;;  %s573_s9 = smov 96   ;;  %s574_s10 = smov 112  }
  0x30   :  { %v108_v33 = vadd.f32 %v107_v24, %v106_v20  ;;  %v115_v34 = vadd.f32 %v114_v21, %v113_v25  ;;  %v121_v35 = vmul.f32 %v437_v15, %v119_v26  ;;  %v218_v36 = vmul.f32 0.8333333, %v118_v18  ;;  %381 = vmatpush1.bf16.msra.mxu0 %v480_v32  ;;  %s575_s11 = smov [#allocation7]  }
  0x31   :  { %vm67_vm12 = vcmp.ge.f32.partialorder %v625_v1, -0.6  ;;  %vm68_vm13 = vcmp.lt.f32.partialorder %v625_v1, -0.2  ;;  %vm72_vm14 = vcmp.ge.f32.partialorder %v625_v1, -0.2  ;;  %382 = vmatprep.subr.bf16.mxu0 %v567_v0 }
  0x32   :  { %v122_v37 = vadd.f32 %v121_v35, %v120_v28  ;;  %v174_v38 = vmul.f32 %v172_v23, %v108_v33  ;;  %v175_v39 = vmul.f32 %v173_v27, %v115_v34  ;;  %v179_v40 = vmul.f32 %v177_v29, %v115_v34  ;;  %vm69_vm15 = vmand %vm67_vm12, %vm68_vm13  ;;  %v483_v23 = vld [vmem:[#allocation5 + $0x28] sm:$0xff]   ;;  %s423_s12 = sshll.u32 %s575_s11, 4  ;;  %s424_s12 = int_to_ptr.vmem [resolvable:$true] %s423_s12 }
  0x33   :  { %v438_v41 = vsel %vm69_vm15, 1.0, %v568_v2  ;;  %vm73_vm0 = vcmp.lt.f32.partialorder %v625_v1, 0.2  ;;  %v124_v42 = vmul.f32 2.5, %v644_v9  ;;  %v125_v43 = vsub.f32 -0.2, %v625_v1  ;;  %p540_p3 = scmp.lt.s32.totalorder %s424_s12, %s424_s12 }
  0x34   :  { %v176_v44 = vadd.f32 %v175_v39, %v174_v38  ;;  %v180_v45 = vmul.f32 %v178_v30, %v122_v37  ;;  %vm74_vm1 = vmand %vm72_vm14, %vm73_vm0  ;;  %v665_v46 = vadd.f32 0.6, %v625_v1  ;;  %v132_v47 = vsub.f32 0.2, %v625_v1  ;;  %383 = vmatpush1.bf16.msra.mxu0 %v481_v52  ;;  %s535_s13 = scalar_lea.vmem %s424_s12, 128 }
  0x35   :  { %v439_v48 = vsel %vm74_vm1, 1.0, %v568_v2  ;;  %v126_v49 = vmul.f32 2.5, %v125_v43  ;;  %v127_v50 = vmul.f32 %v437_v15, %v124_v42  ;;  %v182_v51 = vmul.f32 1.25, %v648_v13  ;;  %384 = vmatprep.subr.bf16.mxu0 %v567_v0  ;;  %p536_p2 = scmp.ne.s32.totalorder %s424_s12, %s535_s13  ;;  %p541_p4 = scmp.lt.s32.totalorder %s535_s13, %s535_s13 }
  0x36   :  { %v181_v53 = vadd.f32 %v180_v45, %v179_v40  ;;  %v219_v54 = vmul.f32 %v217_v31, %v176_v44  ;;  %v131_v55 = vmul.f32 2.5, %v665_v46  ;;  %v133_v56 = vmul.f32 2.5, %v132_v47 }
  0x37   :  { %v128_v57 = vmul.f32 %v438_v41, %v126_v49  ;;  %v183_v58 = vmul.f32 1.25, %v125_v43  ;;  %v187_v59 = vmul.f32 1.25, %v644_v9  ;;  %v188_v63 = vmul.f32 1.25, %v132_v47  ;;  %p542_p5 = por %p541_p4, %p540_p3 }
  0x38   :  { %v220_v60 = vmul.f32 %v218_v36, %v181_v53  ;;  %v134_v61 = vmul.f32 %v438_v41, %v131_v55  ;;  %v135_v62 = vmul.f32 %v439_v48, %v133_v56  ;;  %v184_v4 = vmul.f32 %v182_v51, %v122_v37  ;;  %385 = vmatpush1.bf16.msra.mxu0 %v482_v7  ;;  %v484_v37 = vld [vmem:[#allocation5 + $0x30] sm:$0xff]   ;;  %v485_v51 = vld [vmem:[#allocation5 + $0x38] sm:$0xff]  }
  0x39   :  { %v129_v3 = vadd.f32 %v128_v57, %v127_v50  ;;  %v227_v5 = vmul.f32 0.8333333, %v648_v13  ;;  %v222_v6 = vmul.f32 0.8333333, %v641_v8  ;;  %v228_v12 = vmul.f32 0.8333333, %v132_v47  ;;  %386 = vmatprep.subr.bf16.mxu0 %v567_v0  ;;  %p543_p6 = pnand %p542_p5, %p536_p2 }
  0x3a   :  { %v221_v10 = vadd.f32 %v220_v60, %v219_v54  ;;  %v136_v11 = vadd.f32 %v135_v62, %v134_v61  ;;  %vm77_vm2 = vcmp.ge.f32.partialorder %v625_v1, 0.2  ;;  %v223_v16 = vmul.f32 0.8333333, %v125_v43 }
  0x3b   :  { %v185_v14 = vmul.f32 %v183_v58, %v129_v3  ;;  %v189_v15 = vmul.f32 %v187_v59, %v129_v3  ;;  %vm78_vm3 = vcmp.lt.f32.partialorder %v625_v1, 0.6  ;;  %v679_v8 = vadd.f32 0.2, %v625_v1 }
  0x3c   :  { %258 = vrot.lane.b32.xlu0 %v221_v10, %s569_s1  ;;  %v190_v17 = vmul.f32 %v188_v63, %v136_v11  ;;  %vm79_vm4 = vmand %vm77_vm2, %vm78_vm3  ;;  %v139_v13 = vsub.f32 0.6, %v625_v1  ;;  %v683_v18 = vadd.f32 -0.2, %v625_v1  ;;  %v224_v20 = vmul.f32 %v222_v6, %v181_v53  ;;  %387 = vmatpush1.bf16.msra.mxu0 %v483_v23 }
  0x3d   :  { %v186_v19 = vadd.f32 %v185_v14, %v184_v4  ;;  %v440_v21 = vsel %vm79_vm4, 1.0, %v568_v2  ;;  %v192_v22 = vmul.f32 1.25, %v665_v46  ;;  %v138_v25 = vmul.f32 2.5, %v679_v8  ;;  %388 = vmatprep.subr.bf16.mxu0 %v567_v0 }
  0x3e   :  { %v191_v24 = vadd.f32 %v190_v17, %v189_v15  ;;  %v140_v26 = vmul.f32 2.5, %v139_v13  ;;  %v145_v29 = vmul.f32 2.5, %v683_v18  ;;  %v193_v33 = vmul.f32 1.25, %v139_v13 }
  0x3f   :  { %v229_v27 = vmul.f32 %v227_v5, %v186_v19  ;;  %v225_v28 = vmul.f32 %v223_v16, %v186_v19  ;;  %v141_v31 = vmul.f32 %v439_v48, %v138_v25  ;;  %v194_v35 = vmul.f32 %v192_v22, %v136_v11 }
  0x40   :  { %v230_v30 = vmul.f32 %v228_v12, %v191_v24  ;;  %v142_v32 = vmul.f32 %v440_v21, %v140_v26  ;;  %v232_v36 = vmul.f32 0.8333333, %v644_v9  ;;  %vm82_vm5 = vcmp.ge.f32.partialorder %v625_v1, 0.6  ;;  %389 = vmatpush1.bf16.msra.mxu0 %v484_v37 }
  0x41   :  { %v226_v34 = vadd.f32 %v225_v28, %v224_v20  ;;  %vm83_vm6 = vcmp.lt.f32.partialorder %v625_v1, 1.0  ;;  %v146_v40 = vsub.f32 1.0, %v625_v1  ;;  %v148_v41 = vmul.f32 %v440_v21, %v145_v29  ;;  %390 = vmatprep.subr.bf16.mxu0 %v567_v0 }
  0x42   :  { %v231_v38 = vadd.f32 %v230_v30, %v229_v27  ;;  %v143_v39 = vadd.f32 %v142_v32, %v141_v31  ;;  %vm84_vm7 = vmand %vm82_vm5, %vm83_vm6  ;;  %v197_v42 = vmul.f32 1.25, %v679_v8  ;;  %vm87_vm8 = vcmp.ge.f32.partialorder %v625_v1, 1.0 }
  0x43   :  { %262 = vrot.lane.b32.xlu0 %v226_v34, %s570_s6  ;;  %vm88_vm9 = vcmp.lt.f32.partialorder %v625_v1, 1.4  ;;  %v233_v43 = vmul.f32 0.8333333, %v139_v13  ;;  %v441_v44 = vsel %vm84_vm7, 1.0, %v568_v2  ;;  %v147_v45 = vmul.f32 2.5, %v146_v40 }
  0x44   :  { %266 = vrot.lane.b32.xlu1 %v231_v38, %s571_s7  ;;  %v195_v9 = vmul.f32 %v193_v33, %v143_v39  ;;  %vm89_vm10 = vmand %vm87_vm8, %vm88_vm9  ;;  %v234_v47 = vmul.f32 %v232_v36, %v191_v24  ;;  %v198_v48 = vmul.f32 1.25, %v146_v40  ;;  %v237_v49 = vmul.f32 0.8333333, %v665_v46  ;;  %391 = vmatpush1.bf16.msra.mxu0 %v485_v51  ;;  %v486_v13 = vld [vmem:[#allocation5 + $0x40] sm:$0xff]  }
  0x45   :  { %v701_v50 = vadd.f32 -0.6, %v625_v1  ;;  %v149_v53 = vmul.f32 %v441_v44, %v147_v45  ;;  %v199_v54 = vmul.f32 %v197_v42, %v143_v39  ;;  %v153_v55 = vsub.f32 1.4, %v625_v1  ;;  %392 = vmatprep.subr.bf16.mxu0 %v567_v0 }
  0x46   :  { %v196_v52 = vadd.f32 %v195_v9, %v194_v35  ;;  %v442_v56 = vsel %vm89_vm10, 1.0, %v568_v2  ;;  %vm92_vm11 = vcmp.ge.f32.partialorder %v625_v1, 1.4  ;;  %v453_v46 = vadd.f32 -1.0, %v625_v1 }
  0x47   :  { %v152_v57 = vmul.f32 2.5, %v701_v50  ;;  %v150_v59 = vadd.f32 %v149_v53, %v148_v41  ;;  %v154_v60 = vmul.f32 2.5, %v153_v55  ;;  %v202_v61 = vmul.f32 1.25, %v683_v18 }
  0x48   :  { %v235_v58 = vmul.f32 %v233_v43, %v196_v52  ;;  %v238_v62 = vmul.f32 0.8333333, %v146_v40  ;;  %vm93_vm12 = vcmp.lt.f32.partialorder %v625_v1, 1.8  ;;  %v203_v6 = vmul.f32 1.25, %v153_v55  ;;  %393 = vmatpush1.bf16.msra.mxu0 %v486_v13 }
  0x49   :  { %v155_v63 = vmul.f32 %v441_v44, %v152_v57  ;;  %v200_v4 = vmul.f32 %v198_v48, %v150_v59  ;;  %v156_v5 = vmul.f32 %v442_v56, %v154_v60  ;;  %vm94_vm13 = vmand %vm92_vm11, %vm93_vm12  ;;  %v239_v7 = vmul.f32 %v237_v49, %v196_v52 }
  0x4a   :  { %v236_v3 = vadd.f32 %v235_v58, %v234_v47  ;;  %v242_v10 = vmul.f32 0.8333333, %v679_v8  ;;  %v159_v11 = vmul.f32 2.5, %v453_v46  ;;  %v160_v12 = vsub.f32 1.8, %v625_v1 }
  0x4b   :  { %v201_v14 = vadd.f32 %v200_v4, %v199_v54  ;;  %v157_v15 = vadd.f32 %v156_v5, %v155_v63  ;;  %v204_v16 = vmul.f32 %v202_v61, %v150_v59  ;;  %v443_v17 = vsel %vm94_vm13, 1.0, %v568_v2 }
  0x4c   :  { %270 = vrot.lane.b32.xlu1 %v236_v3, %s565_s0  ;;  %v161_v19 = vmul.f32 2.5, %v160_v12  ;;  %v162_v20 = vmul.f32 %v442_v56, %v159_v11  ;;  %v207_v21 = vmul.f32 1.25, %v701_v50  ;;  %v243_v23 = vmul.f32 0.8333333, %v153_v55 }
  0x4d   :  { %v240_v22 = vmul.f32 %v238_v62, %v201_v14  ;;  %v205_v0 = vmul.f32 %v203_v6, %v157_v15  ;;  %v208_v24 = vmul.f32 1.25, %v160_v12  ;;  %v244_v8 = vmul.f32 %v242_v10, %v201_v14 }
  0x4e   :  { %v163_v25 = vmul.f32 %v443_v17, %v161_v19  ;;  %vm97_vm14 = vcmp.ge.f32.partialorder %v625_v1, 1.8  ;;  %vm98_vm15 = vcmp.lt.f32.partialorder %v625_v1, 2.2  ;;  %v454_v28 = vadd.f32 -1.4, %v625_v1 }
  0x4f   :  { %v241_v26 = vadd.f32 %v240_v22, %v239_v7  ;;  %v206_v27 = vadd.f32 %v205_v0, %v204_v16  ;;  %vm99_vm0 = vmand %vm97_vm14, %vm98_vm15  ;;  %v167_v29 = vsub.f32 2.2, %v625_v1  ;;  %v209_v31 = vmul.f32 %v207_v21, %v157_v15 }
  0x50   :  { %v164_v30 = vadd.f32 %v163_v25, %v162_v20  ;;  %v247_v32 = vmul.f32 0.8333333, %v683_v18  ;;  %v444_v33 = vsel %vm99_vm0, 1.0, %v568_v2  ;;  %v166_v35 = vmul.f32 2.5, %v454_v28 }
  0x51   :  { %274 = vrot.lane.b32.xlu0 %v241_v26, %s572_s8  ;;  %v245_v34 = vmul.f32 %v243_v23, %v206_v27  ;;  %v168_v36 = vmul.f32 2.5, %v167_v29  ;;  %v212_v37 = vmul.f32 1.25, %v453_v46  ;;  %v248_v39 = vmul.f32 0.8333333, %v160_v12 }
  0x52   :  { %v210_v38 = vmul.f32 %v208_v24, %v164_v30  ;;  %v169_v41 = vmul.f32 %v443_v17, %v166_v35  ;;  %v213_v9 = vmul.f32 1.25, %v167_v29  ;;  %v249_v44 = vmul.f32 %v247_v32, %v206_v27 }
  0x53   :  { %v246_v40 = vadd.f32 %v245_v34, %v244_v8  ;;  %v170_v42 = vmul.f32 %v444_v33, %v168_v36  ;;  %v214_v18 = vmul.f32 %v212_v37, %v164_v30  ;;  %v252_v2 = vmul.f32 0.8333333, %v701_v50 }
  0x54   :  { %v211_v43 = vadd.f32 %v210_v38, %v209_v31  ;;  %v253_v49 = vmul.f32 0.8333333, %v167_v29  ;;  %vm285_vm1 = vcmask 130048   ;;  %v433_v57 = vmul.f32 -1.442695, %v625_v1 }
  0x55   :  { %278 = vrot.lane.b32.xlu1 %v246_v40, %s573_s9  ;;  %v171_v45 = vadd.f32 %v170_v42, %v169_v41  ;;  %vm287_vm2 = vcmask 261120   ;;  %vm289_vm3 = vcmask 392192   ;;  %vm291_vm4 = vcmask 523264  }
  0x56   :  { %v250_v47 = vmul.f32 %v248_v39, %v211_v43  ;;  %v254_v53 = vmul.f32 %v252_v2, %v211_v43  ;;  %487 = vpow2.f32 %v433_v57  ;;  %vm293_vm5 = vcmask 654336  }
  0x57   :  { %v215_v48 = vmul.f32 %v213_v9, %v171_v45  ;;  %vm295_vm6 = vcmask 785408   ;;  %vm297_vm7 = vcmask 916480  }
  0x58   :  { %v251_v51 = vadd.f32 %v250_v47, %v249_v44 }
  0x59   :  { %v216_v52 = vadd.f32 %v215_v48, %v214_v18 }
  0x5a   :  { %282 = vrot.lane.b32.xlu0 %v251_v51, %s574_s10 }
  0x5b   :  { %v255_v54 = vmul.f32 %v253_v49, %v216_v52 }
  0x5d   :  { %v256_v55 = vadd.f32 %v255_v54, %v254_v53 }
  0x5f   :  { %v300_v56 = vpack.c.bf16 %v256_v55, %v256_v55 }
  0x60   :  { %v488_v46 = vpop.eup %487 }
  0x61   :  { %464 = vmatprep.mubr.msk.bf16.mxu0 %vm285_vm1, %v300_v56  ;;  %v43_v58 = vadd.f32 1.0, %v488_v46 }
  0x63   :  { %489 = vrcp.f32 %v43_v58 }
  0x6d   :  { %v490_v59 = vpop.eup %489 }
  0x6e   :  { %v46_v60 = vmul.f32 %v490_v59, %v625_v1 }
  0xae   :  { %v259_v50 = vpop.permute.xlu0 %258 }
  0xaf   :  { %v286_v63 = vsel %vm285_vm1, %v46_v60, %v259_v50 }
  0xb5   :  { %v263_v62 = vpop.permute.xlu0 %262 }
  0xb6   :  { %v267_v61 = vpop.permute.xlu1 %266  ;;  %v288_v3 = vsel %vm287_vm2, %v286_v63, %v263_v62 }
  0xb7   :  { %v290_v5 = vsel %vm289_vm3, %v288_v3, %v267_v61 }
  0xbe   :  { %v271_v4 = vpop.permute.xlu1 %270 }
  0xbf   :  { %v292_v7 = vsel %vm291_vm4, %v290_v5, %v271_v4 }
  0xc3   :  { %v275_v6 = vpop.permute.xlu0 %274 }
  0xc4   :  { %v294_v11 = vsel %vm293_vm5, %v292_v7, %v275_v6 }
  0xc7   :  { %v279_v10 = vpop.permute.xlu1 %278 }
  0xc8   :  { %v296_v14 = vsel %vm295_vm6, %v294_v11, %v279_v10 }
  0xcc   :  { %v283_v12 = vpop.permute.xlu0 %282 }
  0xcd   :  { %v298_v15 = vsel %vm297_vm7, %v296_v14, %v283_v12 }
  0xce   :  { %v299_v1 = vpack.c.bf16 %v298_v15, %v298_v15 }
  0xd0   :  { %409 = vmatmul.mubr.bf16.vlgmr.msra.gmra.mrb[0].mxu0 %v299_v1 }
 0x1a3   :  { %v410_v16 = vpop.f32.mrb[0].mxu0 }
 0x1a4   :  { %416 = vst [vmem:[#allocation7] sm:$0xff] %v410_v16  ;;  %v412_v17 = vpop.f32.mrb[1].mxu0 }
 0x1a5   :  { %v413_v13 = vpop.f32.mrb[2].mxu0 }
 0x1a6   :  { %546 = shalt.err (!%p543_p6)
}
 0x1a7   :  { %s547_s16 = scalar_lea.hbm %s740_s2, 128 }
 0x1a8   :  { %p548_p7 = scmp.ne.s32.totalorder %s740_s2, %s547_s16  ;;  %p551_p8 = scmp.lt.u32.totalorder %s547_s16, %s740_s2 }
 0x1aa   :  { %p553_p9 = pnand %p551_p8, %p548_p7 }
 0x1ac   :  { %556 = shalt.err (!%p553_p9)
}
 0x1ad   :  { %426 = dma.vmem_to_hbm [thread:$0]  %s424_s12, 128, %s740_s2, [#allocation4]   ;;  %v414_v19 = vpop.f32.mrb[3].mxu0 }
 0x1ae   :  { %561 = dma.done.wait [#allocation4], 128  }
 0x1af   :  { %562 = vsyncadd [#allocation4], 4294967168 }
 0x1b0   :  { %430 = vsyncpa [#allocation3], 1 }
 0x1b1   :  { %431 = vsyncpa [#allocation6], 1 }
 0x1b2   :  { %432 = vsyncpa [#allocation4], 1 }

</bundles_post_ra>
